<compile_context>
chip_gen: v5e
topology: v5e:2x2
jax: 0.10.0
libtpu: 0.0.40
codegen_flags: <defaults>
</compile_context>

<pallas_src>
import functools

import jax
import jax.numpy as jnp
from jax.experimental import pallas as pl
from jax.experimental.pallas import tpu as pltpu

EPS = 1e-6


def _round_up(x, m):
    return (x + m - 1) // m * m


# ---------------------------------------------------------------------------
# Kernels
# ---------------------------------------------------------------------------
def _resident_kernel(x_ref, alpha_ref, beta_ref, w_ref, b_ref, o_ref):
    """out = x + Linear(LayerNorm(x)); full (H, H) weight resident in VMEM."""
    x = x_ref[...].astype(jnp.float32)                           # (tm, H)
    h = x.shape[-1]

    # LayerNorm with torch semantics: unbiased std (ddof=1), eps on the std.
    mean = jnp.mean(x, axis=-1, keepdims=True)
    centered = x - mean
    var_unbiased = jnp.sum(centered * centered, axis=-1, keepdims=True) * (1.0 / (h - 1))
    std = jnp.sqrt(var_unbiased)
    inv = pl.reciprocal(std + EPS, approx=False)                 # (tm, 1): exact is ~free
    y = centered * (alpha_ref[...] * inv) + beta_ref[...]        # fused alpha*inv scale

    # sublayer: Linear(H -> H) on the MXU (bf16 operands, f32 accumulate).
    s = jnp.dot(y.astype(w_ref.dtype), w_ref[...],
                preferred_element_type=jnp.float32) + b_ref[...]

    # dropout: inference mode => identity.
    # TODO(synk): training-mode dropout would need pltpu.prng_* masking.
    o_ref[...] = (x + s).astype(o_ref.dtype)


def _col_tiled_kernel(tn, x_ref, alpha_ref, beta_ref, w_ref, b_ref, o_ref):
    """Column-tiled variant for large H: weight tile (H, tn), output (tm, tn).

    LayerNorm over the full row is recomputed for every column tile; it is
    cheap VPU work that hides under the MXU and keeps VMEM independent of H^2.
    """
    j = pl.program_id(1)
    x = x_ref[...].astype(jnp.float32)                           # (tm, H)
    h = x.shape[-1]

    mean = jnp.mean(x, axis=-1, keepdims=True)
    centered = x - mean
    var_unbiased = jnp.sum(centered * centered, axis=-1, keepdims=True) * (1.0 / (h - 1))
    std = jnp.sqrt(var_unbiased)
    inv = pl.reciprocal(std + EPS, approx=False)
    y = centered * (alpha_ref[...] * inv) + beta_ref[...]

    s = jnp.dot(y.astype(w_ref.dtype), w_ref[...],
                preferred_element_type=jnp.float32) + b_ref[...]

    col0 = pl.multiple_of(j * tn, 128)
    x_res = x_ref[:, pl.ds(col0, tn)].astype(jnp.float32)        # residual slice
    o_ref[...] = (x_res + s).astype(o_ref.dtype)


# ---------------------------------------------------------------------------
# Tiling / budgeting helpers
# ---------------------------------------------------------------------------
def _vmem_capacity_bytes():
    try:
        return int(pltpu.get_tpu_info().vmem_capacity_bytes)
    except Exception:
        return 64 << 20          # conservative fallback: v7x per-core VMEM


def _pick_tm(rows, cap_rows, requested):
    """Largest row tile <= min(requested, cap_rows, rows), aligned to the MXU
    (256 -> 128 -> 16 -> 8), preferring tiles that divide `rows` evenly so the
    last grid step is not a short masked tile."""
    tm = min(requested, max(cap_rows, 8), rows)
    if tm >= rows:
        return rows
    for align in (256, 128, 16, 8):
        if tm >= align:
            tm = tm // align * align
            break
    tm = max(tm, 8)
    cand = tm
    while cand >= max(tm // 2, 8):
        if rows % cand == 0:
            return cand
        cand -= 8
    return tm


# ---------------------------------------------------------------------------
# Wrapper
# ---------------------------------------------------------------------------
def residual_connection(x, alpha, beta, w, b, *,
                        block_rows=1024, block_cols=512,
                        matmul_dtype=jnp.bfloat16):
    """Fused out = x + Linear(LayerNorm(x)).

    x: (B, S, H); alpha/beta/b: (H,); w: (H, H).
    Pass a bf16 `x` to halve HBM traffic in the memory-bound small-H regime
    (output dtype follows x.dtype).  `matmul_dtype` controls the MXU operand
    dtype of the weight / normalized activations (bf16 everywhere; an fp8
    dtype is an option on v7x only).
    """
    B, S, H = x.shape
    assert H > 1, "unbiased std divides by (H - 1); H must be > 1"
    rows = B * S

    x2d = x.reshape(rows, H)
    alpha2d = alpha.reshape(1, H).astype(jnp.float32)
    beta2d = beta.reshape(1, H).astype(jnp.float32)
    b2d = b.reshape(1, H).astype(jnp.float32)
    w_mm = w.astype(matmul_dtype)

    act_bytes = jnp.dtype(x.dtype).itemsize
    mm_bytes = jnp.dtype(matmul_dtype).itemsize
    sub_mult = 8 * max(1, 4 // mm_bytes)            # sublane packing of weight rows
    lane_h = _round_up(max(H, 128), 128)

    cap = _vmem_capacity_bytes()
    budget = int(cap * 0.84)                        # ~107 MiB on v5e/v6e, ~54 MiB on v7x
    n_temps = 4                                     # x_f32, centered, y, s per row tile
    params_bytes = 3 * 8 * lane_h * 4               # alpha / beta / bias (padded f32)
    headroom = 2 << 20

    w_resident = _round_up(H, sub_mult) * lane_h * mm_bytes   # single-buffered weight

    # 3-deep I/O buffering when HBM-bound (small H); back off to 2 if tight.
    io_buffers = 3 if H <= 2048 else 2

    def _per_row(io_bufs):
        return (io_bufs * lane_h * act_bytes        # x tile buffers
                + io_bufs * lane_h * act_bytes      # out tile buffers
                + n_temps * lane_h * 4)             # in-kernel f32 temporaries

    avail = budget - w_resident - params_bytes - headroom
    cap_rows = avail // _per_row(io_buffers) if avail > 0 else 0
    if cap_rows < 128 and io_buffers == 3:
        io_buffers = 2
        cap_rows = avail // _per_row(io_buffers) if avail > 0 else 0

    # Column-tiled fallback once the (H, H) weight stops fitting comfortably.
    use_col_tiling = (H % 128 == 0 and H > 128 and
                      (avail <= 0 or w_resident > budget // 2 or cap_rows < 128))

    cost = pl.CostEstimate(
        flops=2 * rows * H * H,
        transcendentals=0,
        bytes_accessed=2 * rows * H * act_bytes + H * H * mm_bytes + 3 * H * 4,
    )

    if not use_col_tiling:
        tm = _pick_tm(rows, int(cap_rows), block_rows)
        grid = (pl.cdiv(rows, tm),)
        tm_pad = _round_up(tm, 8)
        # vmem_limit also covers the no-pipeline_mode fallback (2x constants).
        needed = (io_buffers * 2 * tm_pad * lane_h * act_bytes
                  + n_temps * tm_pad * lane_h * 4
                  + 2 * (w_resident + params_bytes)
                  + (4 << 20))
        vmem_limit = int(min(max(needed, 16 << 20), cap - (8 << 20)))

        def _run(use_pipeline_mode):
            if use_pipeline_mode:
                const_kw = dict(pipeline_mode=pl.Buffered(1))
                io_kw = (dict(pipeline_mode=pl.Buffered(io_buffers))
                         if io_buffers != 2 else {})
            else:
                const_kw, io_kw = {}, {}
            return pl.pallas_call(
                _resident_kernel,
                out_shape=jax.ShapeDtypeStruct((rows, H), x.dtype),
                grid_spec=pltpu.PrefetchScalarGridSpec(
                    num_scalar_prefetch=0,
                    grid=grid,
                    in_specs=[
                        pl.BlockSpec((tm, H), lambda i: (i, 0), **io_kw),     # x (pipelined)
                        pl.BlockSpec((1, H), lambda i: (0, 0), **const_kw),   # alpha (resident)
                        pl.BlockSpec((1, H), lambda i: (0, 0), **const_kw),   # beta  (resident)
                        pl.BlockSpec((H, H), lambda i: (0, 0), **const_kw),   # weight (resident)
                        pl.BlockSpec((1, H), lambda i: (0, 0), **const_kw),   # bias  (resident)
                    ],
                    out_specs=pl.BlockSpec((tm, H), lambda i: (i, 0), **io_kw),
                ),
                compiler_params=pltpu.CompilerParams(
                    dimension_semantics=("parallel",),
                    vmem_limit_bytes=vmem_limit,
                ),
                cost_estimate=cost,
            )(x2d, alpha2d, beta2d, w_mm, b2d)

    else:
        # Largest multiple of 128 (<= block_cols) that divides H -> no masked
        # column tail, no OOB reads of the residual slice.
        tn = 128
        for c in range(min(_round_up(block_cols, 128), H), 127, -128):
            if H % c == 0:
                tn = c
                break
        lane_n = _round_up(tn, 128)
        w_tile_bytes = 2 * _round_up(H, sub_mult) * lane_n * mm_bytes   # 2-buffered along j
        per_row = (2 * lane_h * act_bytes + 2 * lane_n * act_bytes
                   + n_temps * lane_h * 4 + lane_n * 4)
        avail_c = budget - w_tile_bytes - params_bytes - headroom
        cap_rows_c = avail_c // per_row if avail_c > 0 else 8
        tm = _pick_tm(rows, int(cap_rows_c), block_rows)
        grid = (pl.cdiv(rows, tm), H // tn)
        tm_pad = _round_up(tm, 8)
        needed = (2 * tm_pad * lane_h * act_bytes + 2 * tm_pad * lane_n * act_bytes
                  + n_temps * tm_pad * lane_h * 4 + tm_pad * lane_n * 4
                  + w_tile_bytes + 2 * params_bytes + (4 << 20))
        vmem_limit = int(min(max(needed, 16 << 20), cap - (8 << 20)))
        kernel = functools.partial(_col_tiled_kernel, tn)

        def _run(use_pipeline_mode):
            const_kw = dict(pipeline_mode=pl.Buffered(1)) if use_pipeline_mode else {}
            return pl.pallas_call(
                kernel,
                out_shape=jax.ShapeDtypeStruct((rows, H), x.dtype),
                grid_spec=pltpu.PrefetchScalarGridSpec(
                    num_scalar_prefetch=0,
                    grid=grid,
                    in_specs=[
                        pl.BlockSpec((tm, H), lambda i, j: (i, 0)),             # x: full row per i
                        pl.BlockSpec((1, H), lambda i, j: (0, 0), **const_kw),  # alpha
                        pl.BlockSpec((1, H), lambda i, j: (0, 0), **const_kw),  # beta
                        pl.BlockSpec((H, tn), lambda i, j: (0, j)),             # weight col tile
                        pl.BlockSpec((1, tn), lambda i, j: (0, j)),             # bias col tile
                    ],
                    out_specs=pl.BlockSpec((tm, tn), lambda i, j: (i, j)),
                ),
                compiler_params=pltpu.CompilerParams(
                    dimension_semantics=("parallel", "arbitrary"),
                    vmem_limit_bytes=vmem_limit,
                ),
                cost_estimate=cost,
            )(x2d, alpha2d, beta2d, w_mm, b2d)

    try:
        out2d = _run(True)
    except Exception:
        # pl.Buffered-based buffering not accepted by this jax build: fall back
        # to default (double-buffered) BlockSpecs, which is always valid.
        out2d = _run(False)

    return out2d.reshape(B, S, H)


if __name__ == "__main__":
    # Small test shape; production hidden sizes should be multiples of 128 so
    # the output BlockSpec is lane-dense and the column-tiled path is usable.
    B, S, H = 2, 8, 32

    key = jax.random.PRNGKey(0)
    kx, kw, kb = jax.random.split(key, 3)

    x = jax.random.normal(kx, (B, S, H), dtype=jnp.float32)

    # LayerNormalization params (init: alpha=1, bias=0, as in the module).
    alpha = jnp.ones((H,), dtype=jnp.float32)
    beta = jnp.zeros((H,), dtype=jnp.float32)

    # Deterministic sublayer (Linear H->H) params.
    w = jax.random.normal(kw, (H, H), dtype=jnp.float32) * (1.0 / jnp.sqrt(H))
    b = jax.random.normal(kb, (H,), dtype=jnp.float32) * 0.01

    out = residual_connection(x, alpha, beta, w, b)
    jax.block_until_ready(out)

    # Pure-JAX reference (torch-exact LayerNorm, f32 matmul).
    mean = jnp.mean(x, axis=-1, keepdims=True)
    std = jnp.sqrt(jnp.sum((x - mean) ** 2, axis=-1, keepdims=True) / (H - 1))
    y = alpha * (x - mean) / (std + EPS) + beta
    ref = x + (jnp.einsum("bsh,hk->bsk", y, w) + b)

    # bf16 MXU operands (f32 accumulate) -> widened tolerance vs the exact-f32
    # reference; typical error is well below this.
    assert jnp.allclose(out, ref, atol=5e-2, rtol=5e-2), "mismatch vs reference"

    print("KERNEL_OK")
</pallas_src>

<mosaic_0001>
module attributes {stable_mosaic.version = 11 : i64} {
  func.func @_resident_kernel(%arg0: i32, %arg1: memref<16x32xf32, #tpu.memory_space<vmem>>, %arg2: memref<1x32xf32, #tpu.memory_space<vmem>>, %arg3: memref<1x32xf32, #tpu.memory_space<vmem>>, %arg4: memref<32x32xbf16, #tpu.memory_space<vmem>>, %arg5: memref<1x32xf32, #tpu.memory_space<vmem>>, %arg6: memref<16x32xf32, #tpu.memory_space<vmem>>) attributes {dimension_semantics = [#tpu.dimension_semantics<parallel>], iteration_bounds = array<i64: 1>, scalar_prefetch = 0 : i64, scratch_operands = 0 : i64, tpu.core_type = #tpu.core_type<tc>, window_params = [{transform_indices = @transform_0, window_bounds = array<i64: 16, 32>}, {pipeline_mode = #tpu.pipeline_mode<synchronous>, transform_indices = @transform_1, window_bounds = array<i64: 1, 32>}, {pipeline_mode = #tpu.pipeline_mode<synchronous>, transform_indices = @transform_2, window_bounds = array<i64: 1, 32>}, {pipeline_mode = #tpu.pipeline_mode<synchronous>, transform_indices = @transform_3, window_bounds = array<i64: 32, 32>}, {pipeline_mode = #tpu.pipeline_mode<synchronous>, transform_indices = @transform_4, window_bounds = array<i64: 1, 32>}, {transform_indices = @transform_5, window_bounds = array<i64: 16, 32>}]} {
    %c0 = arith.constant 0 : index
    %c0_0 = arith.constant 0 : index
    %0 = vector.load %arg1[%c0, %c0_0] : memref<16x32xf32, #tpu.memory_space<vmem>>, vector<16x32xf32>
    %cst = arith.constant dense<0.000000e+00> : vector<16xf32>
    %1 = vector.multi_reduction <add>, %0, %cst [1] : vector<16x32xf32> to vector<16xf32>
    %2 = vector.shape_cast %1 : vector<16xf32> to vector<16x1xf32>
    %cst_1 = arith.constant 3.200000e+01 : f32
    %3 = vector.broadcast %cst_1 : f32 to vector<16x1xf32>
    %4 = arith.divf %2, %3 : vector<16x1xf32>
    %5 = vector.broadcast %4 : vector<16x1xf32> to vector<16x32xf32>
    %6 = arith.subf %0, %5 : vector<16x32xf32>
    %7 = arith.mulf %6, %6 : vector<16x32xf32>
    %cst_2 = arith.constant dense<0.000000e+00> : vector<16xf32>
    %8 = vector.multi_reduction <add>, %7, %cst_2 [1] : vector<16x32xf32> to vector<16xf32>
    %9 = vector.shape_cast %8 : vector<16xf32> to vector<16x1xf32>
    %cst_3 = arith.constant 0.0322580636 : f32
    %10 = vector.broadcast %cst_3 : f32 to vector<16x1xf32>
    %11 = arith.mulf %9, %10 : vector<16x1xf32>
    %12 = math.sqrt %11 : vector<16x1xf32>
    %cst_4 = arith.constant 9.99999997E-7 : f32
    %13 = vector.broadcast %cst_4 : f32 to vector<16x1xf32>
    %14 = arith.addf %12, %13 : vector<16x1xf32>
    %15 = tpu.reciprocal %14 : vector<16x1xf32> -> vector<16x1xf32>
    %c0_5 = arith.constant 0 : index
    %c0_6 = arith.constant 0 : index
    %16 = vector.load %arg2[%c0_5, %c0_6] : memref<1x32xf32, #tpu.memory_space<vmem>>, vector<1x32xf32>
    %17 = vector.broadcast %16 : vector<1x32xf32> to vector<16x32xf32>
    %18 = vector.broadcast %15 : vector<16x1xf32> to vector<16x32xf32>
    %19 = arith.mulf %17, %18 : vector<16x32xf32>
    %20 = arith.mulf %6, %19 : vector<16x32xf32>
    %c0_7 = arith.constant 0 : index
    %c0_8 = arith.constant 0 : index
    %21 = vector.load %arg3[%c0_7, %c0_8] : memref<1x32xf32, #tpu.memory_space<vmem>>, vector<1x32xf32>
    %22 = vector.broadcast %21 : vector<1x32xf32> to vector<16x32xf32>
    %23 = arith.addf %20, %22 : vector<16x32xf32>
    %24 = arith.truncf %23 : vector<16x32xf32> to vector<16x32xbf16>
    %c0_9 = arith.constant 0 : index
    %c0_10 = arith.constant 0 : index
    %25 = vector.load %arg4[%c0_9, %c0_10] : memref<32x32xbf16, #tpu.memory_space<vmem>>, vector<32x32xbf16>
    %cst_11 = arith.constant dense<0.000000e+00> : vector<16x32xf32>
    %26 = tpu.matmul %24, %25, %cst_11 {dimension_numbers = #tpu.dot_dimension_numbers<[1], [0], [0], [1], [0, 0, 1, 1], [], []>} : vector<16x32xbf16>, vector<32x32xbf16>, vector<16x32xf32> -> vector<16x32xf32>
    %c0_12 = arith.constant 0 : index
    %c0_13 = arith.constant 0 : index
    %27 = vector.load %arg5[%c0_12, %c0_13] : memref<1x32xf32, #tpu.memory_space<vmem>>, vector<1x32xf32>
    %28 = vector.broadcast %27 : vector<1x32xf32> to vector<16x32xf32>
    %29 = arith.addf %26, %28 : vector<16x32xf32>
    %30 = arith.addf %0, %29 : vector<16x32xf32>
    %c0_14 = arith.constant 0 : index
    %c0_15 = arith.constant 0 : index
    %31 = vector.load %arg6[%c0_14, %c0_15] : memref<16x32xf32, #tpu.memory_space<vmem>>, vector<16x32xf32>
    tpu.vector_store %arg6[%c0_14, %c0_15], %30 {strides = array<i32>} : memref<16x32xf32, #tpu.memory_space<vmem>>, vector<16x32xf32>,
    return
  }
  func.func @transform_0(%arg0: i32) -> (i32, i32) {
    %c0_i32 = arith.constant 0 : i32
    %c0_i32_0 = arith.constant 0 : i32
    return %arg0, %c0_i32 : i32, i32
  }
  func.func @transform_1(%arg0: i32) -> (i32, i32) {
    %c0_i32 = arith.constant 0 : i32
    %c0_i32_0 = arith.constant 0 : i32
    %c0_i32_1 = arith.constant 0 : i32
    return %c0_i32, %c0_i32_0 : i32, i32
  }
  func.func @transform_2(%arg0: i32) -> (i32, i32) {
    %c0_i32 = arith.constant 0 : i32
    %c0_i32_0 = arith.constant 0 : i32
    %c0_i32_1 = arith.constant 0 : i32
    return %c0_i32, %c0_i32_0 : i32, i32
  }
  func.func @transform_3(%arg0: i32) -> (i32, i32) {
    %c0_i32 = arith.constant 0 : i32
    %c0_i32_0 = arith.constant 0 : i32
    %c0_i32_1 = arith.constant 0 : i32
    return %c0_i32, %c0_i32_0 : i32, i32
  }
  func.func @transform_4(%arg0: i32) -> (i32, i32) {
    %c0_i32 = arith.constant 0 : i32
    %c0_i32_0 = arith.constant 0 : i32
    %c0_i32_1 = arith.constant 0 : i32
    return %c0_i32, %c0_i32_0 : i32, i32
  }
  func.func @transform_5(%arg0: i32) -> (i32, i32) {
    %c0_i32 = arith.constant 0 : i32
    %c0_i32_0 = arith.constant 0 : i32
    return %arg0, %c0_i32 : i32, i32
  }
}

</mosaic_0001>

<bundles_post_ra>
// kernel: tpu_custom_call.1
= control target key start
LH: loop header
LB: loop body
LE: loop exit
PB: predicated region body
PF: predicated region fallthrough
CT: control target
= control target key end

     0   :  { %10 = vsyncpa [#allocation3], 0  ;;  %s452_s0 = inlined_call_operand.hbm [shape: f32[16,32], index: 0, kind: input, shape index: {}]   ;;  %s453_s1 = inlined_call_operand.hbm [shape: f32[1,32], index: 1, kind: input, shape index: {}]   ;;  %s454_s2 = inlined_call_operand.vmem [shape: f32[1,32], index: 2, kind: input, shape index: {}]   ;;  %s455_s3 = inlined_call_operand.hbm [shape: bf16[32,32], index: 3, kind: input, shape index: {}]   ;;  %s456_s4 = inlined_call_operand.vmem [shape: f32[1,32], index: 4, kind: input, shape index: {}]   ;;  %s457_s5 = inlined_call_operand.hbm [shape: f32[16,32], index: 5, kind: output, shape index: {}]  }
   0x1   :  { %11 = vsyncpa [#allocation6], 0  ;;  %s31_s20 = sshll.u32 %s453_s1, 4  ;;  %s32_s20 = int_to_ptr.hbm [resolvable:$true] %s31_s20 }
   0x2   :  { %12 = vsyncpa [#allocation4], 0  ;;  %s362_s21 = smov [#allocation5]   ;;  %s17_s25 = sshll.u32 %s452_s0, 4  ;;  %s18_s25 = int_to_ptr.hbm [resolvable:$true] %s17_s25 }
   0x3   :  { %s33_s22 = sshll.u32 %s362_s21, 4  ;;  %s363_s26 = smov [#allocation2]   ;;  %s34_s22 = int_to_ptr.vmem [resolvable:$true] %s33_s22 }
   0x4   :  { %36 = dma.hbm_to_vmem [thread:$0]  %s32_s20, 16, %s34_s22, [#allocation6]  }
   0x5   :  { %s19_s27 = sshll.u32 %s363_s26, 4  ;;  %s364_s28 = smov 128   ;;  %s20_s27 = int_to_ptr.vmem [resolvable:$true] %s19_s27 }
   0x6   :  { %s365_s29 = smov 8   ;;  %s43_s6 = sshll.u32 %s455_s3, 4  ;;  %s44_s6 = int_to_ptr.hbm [resolvable:$true] %s43_s6 }
   0x7   :  { %25 = dma.hbm_to_vmem [thread:$0]  %s18_s25, 256, %s20_s27, [#allocation3], %s364_s28, %s364_s28, %s365_s29  }
   0x8   :  { %s366_s7 = smov [#allocation7]   ;;  %s367_s0 = smov 64  }
   0x9   :  { %s45_s8 = sshll.u32 %s366_s7, 4  ;;  %s368_s9 = smov 4   ;;  %s46_s8 = int_to_ptr.vmem [resolvable:$true] %s45_s8 }
   0xa   :  { %51 = dma.hbm_to_vmem [thread:$0]  %s44_s6, 256, %s46_s8, [#allocation6], %s367_s0, %s367_s0, %s368_s9  }
   0xb   :  { %356 = dma.done.wait [#allocation3], 256  }
   0xc   :  { %357 = vsyncadd [#allocation3], 4294967040 }
   0xd   :  { %358 = dma.done.wait [#allocation6], 272  }
   0xe   :  { %359 = vsyncadd [#allocation6], 4294967024  ;;  %vm69_vm0 = vcmask 261120   ;;  %v413_v0 = vld [vmem:[#allocation2] sm:$0xff]  ;;  %v417_v2 = vld [vmem:[#allocation2 + $0x8] sm:$0xff]  ;;  %v369_v4 = vmov 32.0  }
   0xf   :  { %v70_v1 = vsel %vm69_vm0, %v413_v0, 0.0  ;;  %v73_v3 = vsel %vm69_vm0, %v417_v2, 0.0  ;;  %250 = vrcp.f32 %v369_v4  ;;  %v237_v21 = vld [vmem:[#allocation7 + $0x8] sm:$0xff]  ;;  %v236_v23 = vld [vmem:[#allocation7] sm:$0xff]  ;;  %v247_v61 = vld [vmem:[#allocation5] ss:$0 sm:$0xff] }
  0x10   :  { %71 = vadd.xlane.f32.xlu0 %v70_v1  ;;  %195 = vmatpush.bf16.msra.mxu0 %v237_v21  ;;  %s370_s13 = smov [#allocation8]   ;;  %s213_s16 = sshll.u32 %s457_s5, 4  ;;  %s214_s16 = int_to_ptr.hbm [resolvable:$true] %s213_s16 }
  0x14   :  { %196 = vmatpush.bf16.msra.mxu0 %v236_v23 }
  0x15   :  { %v251_v5 = vpop.eup %250 }
  0x16   :  { %v77_v6 = vmul.f32 32.0, %v251_v5  ;;  %vm81_vm1 = vweird.f32 %v251_v5 }
  0x18   :  { %74 = vadd.xlane.f32.xlu0 %v73_v3  ;;  %v78_v7 = vsub.f32 1.0, %v77_v6 }
  0x1a   :  { %v79_v8 = vmul.f32 %v251_v5, %v78_v7 }
  0x1c   :  { %v80_v9 = vadd.f32 %v251_v5, %v79_v8 }
  0x1e   :  { %v82_v10 = vsel %vm81_vm1, %v251_v5, %v80_v9 }
  0x83   :  { %v72_v11 = vpop.xlane.xlu0 %71 }
  0x84   :  { %v83_v12 = vmul.f32 %v82_v10, %v72_v11  ;;  %v248_v11 = vld [vmem:[%s454_s2] ss:$0 sm:$0xff]  ;;  %s211_s2 = sshll.u32 %s370_s13, 4  ;;  %s212_s2 = int_to_ptr.vmem [resolvable:$true] %s211_s2 }
  0x86   :  { %v422_v13 = vsub.f32 %v413_v0, %v83_v12 }
  0x88   :  { %v87_v14 = vmul.f32 %v422_v13, %v422_v13 }
  0x8a   :  { %v89_v15 = vsel %vm69_vm0, %v87_v14, 0.0 }
  0x8b   :  { %90 = vadd.xlane.f32.xlu1 %v89_v15  ;;  %v75_v16 = vpop.xlane.xlu0 %74 }
  0x8c   :  { %v84_v17 = vmul.f32 %v82_v10, %v75_v16 }
  0x8e   :  { %v428_v18 = vsub.f32 %v417_v2, %v84_v17  ;;  %v249_v17 = vld [vmem:[%s456_s4] ss:$0 sm:$0xff] }
  0x90   :  { %v88_v19 = vmul.f32 %v428_v18, %v428_v18 }
  0x92   :  { %v92_v20 = vsel %vm69_vm0, %v88_v19, 0.0 }
  0x93   :  { %93 = vadd.xlane.f32.xlu1 %v92_v20 }
  0xfe   :  { %v91_v22 = vpop.xlane.xlu1 %90 }
  0xff   :  { %v95_v24 = vmul.f32 0.032258064, %v91_v22 }
 0x101   :  { %252 = vrsqrt.f32 %v95_v24  ;;  %vm104_vm2 = vcmp.eq.f32.partialorder %v95_v24, inf  ;;  %v107_v37 = vand.u32 2147483648, %v95_v24  ;;  %vm106_vm3 = vcmp.eq.f32.partialorder %v95_v24, 0.0 }
 0x106   :  { %v94_v25 = vpop.xlane.xlu1 %93 }
 0x107   :  { %v253_v26 = vpop.eup %252  ;;  %v96_v27 = vmul.f32 0.032258064, %v94_v25 }
 0x108   :  { %v98_v28 = vmul.f32 %v253_v26, %v95_v24 }
 0x109   :  { %254 = vrsqrt.f32 %v96_v27  ;;  %vm116_vm4 = vcmp.eq.f32.partialorder %v96_v27, inf  ;;  %v119_v45 = vand.u32 2147483648, %v96_v27  ;;  %vm118_vm5 = vcmp.eq.f32.partialorder %v96_v27, 0.0 }
 0x10a   :  { %v99_v29 = vmul.f32 %v253_v26, %v98_v28 }
 0x10c   :  { %v100_v30 = vmul.f32 0.5, %v99_v29 }
 0x10e   :  { %v101_v31 = vsub.f32 1.5, %v100_v30 }
 0x10f   :  { %v255_v32 = vpop.eup %254 }
 0x110   :  { %v102_v33 = vmul.f32 %v253_v26, %v101_v31  ;;  %v110_v34 = vmul.f32 %v255_v32, %v96_v27 }
 0x112   :  { %v103_v35 = vmul.f32 %v102_v33, %v95_v24  ;;  %v111_v36 = vmul.f32 %v255_v32, %v110_v34 }
 0x114   :  { %v105_v38 = vsel %vm104_vm2, %v95_v24, %v103_v35  ;;  %v112_v39 = vmul.f32 0.5, %v111_v36 }
 0x115   :  { %v108_v40 = vsel %vm106_vm3, %v107_v37, %v105_v38 }
 0x116   :  { %v113_v41 = vsub.f32 1.5, %v112_v39  ;;  %v121_v42 = vadd.f32 1e-06, %v108_v40 }
 0x118   :  { %v114_v43 = vmul.f32 %v255_v32, %v113_v41  ;;  %256 = vrcp.f32 %v121_v42  ;;  %v134_v53 = vand.u32 2147483648, %v121_v42  ;;  %vm128_vm7 = vweird.f32 %v121_v42 }
 0x119   :  { %v132_v55 = vand.u32 2147483647, %v121_v42 }
 0x11a   :  { %v115_v44 = vmul.f32 %v114_v43, %v96_v27  ;;  %v135_v59 = vor.u32 1.1754944e-38, %v134_v53 }
 0x11b   :  { %vm133_vm9 = vcmp.eq.f32.partialorder %v132_v55, 8.507059e+37 }
 0x11c   :  { %v117_v46 = vsel %vm116_vm4, %v96_v27, %v115_v44 }
 0x11d   :  { %v120_v47 = vsel %vm118_vm5, %v119_v45, %v117_v46 }
 0x11e   :  { %v257_v48 = vpop.eup %256  ;;  %v122_v49 = vadd.f32 1e-06, %v120_v47 }
 0x11f   :  { %v124_v50 = vmul.f32 %v257_v48, %v121_v42  ;;  %vm129_vm6 = vweird.f32 %v257_v48 }
 0x120   :  { %258 = vrcp.f32 %v122_v49  ;;  %vm130_vm8 = vmor %vm128_vm7, %vm129_vm6  ;;  %v148_v63 = vand.u32 2147483648, %v122_v49  ;;  %v146_v3 = vand.u32 2147483647, %v122_v49  ;;  %vm142_vm11 = vweird.f32 %v122_v49 }
 0x121   :  { %v125_v51 = vsub.f32 1.0, %v124_v50 }
 0x122   :  { %v149_v6 = vor.u32 1.1754944e-38, %v148_v63  ;;  %vm147_vm13 = vcmp.eq.f32.partialorder %v146_v3, 8.507059e+37 }
 0x123   :  { %v126_v52 = vmul.f32 %v257_v48, %v125_v51 }
 0x125   :  { %v127_v54 = vadd.f32 %v257_v48, %v126_v52 }
 0x126   :  { %v259_v56 = vpop.eup %258 }
 0x127   :  { %v131_v57 = vsel %vm130_vm8, %v257_v48, %v127_v54  ;;  %v138_v58 = vmul.f32 %v259_v56, %v122_v49  ;;  %vm143_vm10 = vweird.f32 %v259_v56 }
 0x128   :  { %v136_v62 = vsel %vm133_vm9, %v135_v59, %v131_v57  ;;  %vm144_vm12 = vmor %vm142_vm11, %vm143_vm10 }
 0x129   :  { %v139_v60 = vsub.f32 1.0, %v138_v58  ;;  %v155_v5 = vmul.f32 %v247_v61, %v136_v62 }
 0x12b   :  { %v140_v1 = vmul.f32 %v259_v56, %v139_v60  ;;  %v157_v10 = vmul.f32 %v155_v5, %v422_v13 }
 0x12d   :  { %v141_v4 = vadd.f32 %v259_v56, %v140_v1  ;;  %v163_v14 = vadd.f32 %v248_v11, %v157_v10 }
 0x12f   :  { %v145_v7 = vsel %vm144_vm12, %v259_v56, %v141_v4 }
 0x130   :  { %v150_v8 = vsel %vm147_vm13, %v149_v6, %v145_v7 }
 0x131   :  { %v156_v9 = vmul.f32 %v247_v61, %v150_v8 }
 0x133   :  { %v158_v12 = vmul.f32 %v156_v9, %v428_v18 }
 0x135   :  { %v164_v15 = vadd.f32 %v248_v11, %v158_v12 }
 0x137   :  { %v165_v16 = vpack.c.bf16 %v164_v15, %v163_v14 }
 0x139   :  { %235 = vmatmul.msk.bf16.vlgmr.msra.gmra.mxu0 %vm69_vm0, %v165_v16 }
 0x1b6   :  { %v198_v19 = vpop.f32.mrf.mxu0 }
 0x1b7   :  { %v199_v20 = vadd.f32 %v249_v17, %v198_v19 }
 0x1b9   :  { %v203_v21 = vadd.f32 %v199_v20, %v413_v0 }
 0x1bb   :  { %205 = vst.msk [vmem:[#allocation8] sm:$0xff] %vm69_vm0, %v203_v21 }
 0x1be   :  { %v200_v13 = vpop.f32.mrf.mxu0 }
 0x1bf   :  { %v201_v18 = vadd.f32 %v249_v17, %v200_v13 }
 0x1c1   :  { %v204_v22 = vadd.f32 %v201_v18, %v417_v2 }
 0x1c3   :  { %206 = vst.msk [vmem:[#allocation8 + $0x8] sm:$0xff] %vm69_vm0, %v204_v22 }
 0x1c4   :  { %219 = dma.vmem_to_hbm [thread:$0]  %s212_s2, 256, %s214_s16, [#allocation4], %s364_s28, %s364_s28, %s365_s29  }
 0x1c5   :  { %360 = dma.done.wait [#allocation4], 256  }
 0x1c6   :  { %361 = vsyncadd [#allocation4], 4294967040 }
 0x1c7   :  { %224 = vsyncpa [#allocation3], 1 }
 0x1c8   :  { %225 = vsyncpa [#allocation6], 1 }
 0x1c9   :  { %226 = vsyncpa [#allocation4], 1 }

</bundles_post_ra>
